<compile_context>
chip_gen: v6e
topology: v6e:2x2x1
jax: 0.10.0
libtpu: 0.0.40
codegen_flags: <defaults>
</compile_context>

<pallas_src>
import jax
import jax.numpy as jnp
from jax.experimental import pallas as pl
from jax.experimental.pallas import tpu as pltpu

HIDDEN = 256
_TILE_CAP = 1024           # max batch-tile rows (portable incl. v5e scoped VMEM)
_SPLIT_THRESHOLD = 512     # force >=2 grid steps above this batch (v7x megacore)


def _critic_kernel(x_ref, u_ref,                 # [TB, S] f32, [TB, A] f32
                   ws14_ref, wa14_ref, b14_ref,  # [S,512] bf16, [A,512] bf16, [1,512] f32
                   w2_ref, b2_ref,               # [256,256] bf16, [1,256] f32
                   w5_ref, b5_ref,               # [256,256] bf16, [1,256] f32
                   w36_ref,                      # [1,512] f32 (w3 row | w6 row)
                   b36_ref,                      # [2] f32 (SMEM)
                   q_ref):                       # [TB, 2] f32
    # bf16 cast happens in-register (avoids an extra HBM round-trip in the wrapper)
    xb = x_ref[...].astype(jnp.bfloat16)
    ub = u_ref[...].astype(jnp.bfloat16)

    # --- fused layer 1 of both heads, split over the state / action inputs ---
    hg = (jnp.dot(xb, ws14_ref[...], preferred_element_type=jnp.float32)
          + jnp.dot(ub, wa14_ref[...], preferred_element_type=jnp.float32)
          + b14_ref[...])
    hg = jnp.maximum(hg, 0.0)
    h = hg[:, :HIDDEN].astype(jnp.bfloat16)     # head-1 activations (tile-aligned)
    g = hg[:, HIDDEN:].astype(jnp.bfloat16)     # head-2 activations

    # --- layer 2: two MXU-native 256x256 bf16 matmuls, f32 accumulation ---
    h2 = jnp.dot(h, w2_ref[...], preferred_element_type=jnp.float32) + b2_ref[...]
    h2 = jnp.maximum(h2, 0.0)
    g2 = jnp.dot(g, w5_ref[...], preferred_element_type=jnp.float32) + b5_ref[...]
    g2 = jnp.maximum(g2, 0.0)

    # --- output layers: N=1 projections on VPU + lane reduction (no MXU) ---
    w3_row = w36_ref[0:1, :HIDDEN]   # [1, 256]
    w6_row = w36_ref[0:1, HIDDEN:]   # [1, 256]
    q1 = jnp.sum(h2 * w3_row, axis=-1, keepdims=True) + b36_ref[0]
    q2 = jnp.sum(g2 * w6_row, axis=-1, keepdims=True) + b36_ref[1]

    # single combined [TB, 2] store
    q_ref[...] = jnp.concatenate([q1, q2], axis=-1).astype(q_ref.dtype)


def _round_up(x, m):
    return ((x + m - 1) // m) * m


def pack_critic_params(params, state_dim):
    """Pack / cast the Critic weights ONCE (outside the hot forward path)."""
    (w1, b1, w2, b2, w3, b3, w4, b4, w5, b5, w6, b6) = params
    ws14 = jnp.concatenate([w1[:state_dim], w4[:state_dim]], axis=1).astype(jnp.bfloat16)
    wa14 = jnp.concatenate([w1[state_dim:], w4[state_dim:]], axis=1).astype(jnp.bfloat16)
    b14 = jnp.concatenate([b1, b4], axis=1).astype(jnp.float32)               # [1, 512]
    w2b = w2.astype(jnp.bfloat16)
    w5b = w5.astype(jnp.bfloat16)
    b2f = b2.astype(jnp.float32)
    b5f = b5.astype(jnp.float32)
    w36 = jnp.concatenate([w3.T, w6.T], axis=1).astype(jnp.float32)           # [1, 512]
    b36 = jnp.concatenate([b3.reshape(-1), b6.reshape(-1)]).astype(jnp.float32)  # [2]
    return (ws14, wa14, b14, w2b, b2f, w5b, b5f, w36, b36)


@jax.jit
def critic_forward(x, u, packed):
    """x: [B, state_dim], u: [B, action_dim], packed = pack_critic_params(...).
    Returns (q1, q2), each [B, 1] f32."""
    (ws14, wa14, b14, w2b, b2f, w5b, b5f, w36, b36) = packed
    B, state_dim = x.shape
    action_dim = u.shape[1]
    in_dim = state_dim + action_dim

    # ---- adaptive batch tiling ----
    B8 = _round_up(B, 8)
    if B8 < _SPLIT_THRESHOLD:
        TB = B8                                   # single tile: compute is tiny,
        grid_b = 1                                # extra grid steps are pure overhead
    else:
        # >=2 tiles (v7x: shard the 'parallel' axis across both TensorCores),
        # capped at _TILE_CAP rows, rounded to 16 to limit batch padding waste.
        ntiles = max(2, pl.cdiv(B8, _TILE_CAP))
        TB = _round_up(pl.cdiv(B8, ntiles), 16)
        grid_b = pl.cdiv(B8, TB)
    B_pad = grid_b * TB

    x = x.astype(jnp.float32)
    u = u.astype(jnp.float32)
    if B_pad != B:
        x = jnp.pad(x, ((0, B_pad - B), (0, 0)))
        u = jnp.pad(u, ((0, B_pad - B), (0, 0)))

    resident = lambda shape: pl.BlockSpec(shape, lambda i: (0, 0))

    flops = 2 * B_pad * (in_dim * 2 * HIDDEN + 2 * HIDDEN * HIDDEN + 2 * HIDDEN)
    weight_bytes = ((ws14.size + wa14.size + w2b.size + w5b.size) * 2
                    + (b14.size + b2f.size + b5f.size + w36.size + b36.size) * 4)
    bytes_accessed = (x.size + u.size) * 4 + weight_bytes + B_pad * 2 * 4

    q = pl.pallas_call(
        _critic_kernel,
        out_shape=jax.ShapeDtypeStruct((B_pad, 2), jnp.float32),
        grid=(grid_b,),
        in_specs=[
            pl.BlockSpec((TB, state_dim), lambda i: (i, 0)),    # x tile
            pl.BlockSpec((TB, action_dim), lambda i: (i, 0)),   # u tile
            resident((state_dim, 2 * HIDDEN)),                  # ws14
            resident((action_dim, 2 * HIDDEN)),                 # wa14
            resident((1, 2 * HIDDEN)),                          # b14
            resident((HIDDEN, HIDDEN)),                         # w2
            resident((1, HIDDEN)),                              # b2
            resident((HIDDEN, HIDDEN)),                         # w5
            resident((1, HIDDEN)),                              # b5
            resident((1, 2 * HIDDEN)),                          # w36
            pl.BlockSpec(memory_space=pltpu.MemorySpace.SMEM),  # b36 scalars
        ],
        out_specs=pl.BlockSpec((TB, 2), lambda i: (i, 0)),
        compiler_params=pltpu.CompilerParams(
            dimension_semantics=("parallel",),
            vmem_limit_bytes=32 * 1024 * 1024),
        cost_estimate=pl.CostEstimate(
            flops=flops, transcendentals=0, bytes_accessed=bytes_accessed),
    )(x, u, ws14, wa14, b14, w2b, b2f, w5b, b5f, w36, b36)

    q = q[:B]
    return q[:, 0:1], q[:, 1:2]


def _orthogonal(key, in_dim, out_dim):
    """Deterministic orthogonal-ish init (mirrors nn.init.orthogonal_ semantics),
    returned already in [in, out] layout for the kernel."""
    a = jax.random.normal(key, (max(in_dim, out_dim), min(in_dim, out_dim)),
                          dtype=jnp.float32)
    q, r = jnp.linalg.qr(a)
    q = q * jnp.sign(jnp.diagonal(r))[None, :]
    if in_dim >= out_dim:
        w = q[:in_dim, :out_dim]                 # [in, out]
    else:
        w = q[:out_dim, :in_dim].T               # [in, out]
    return w.astype(jnp.float32)


def init_critic_params(key, state_dim, action_dim):
    in_dim = state_dim + action_dim
    dims = [(in_dim, 256), (256, 256), (256, 1),         # head 1 (l1, l2, l3)
            (in_dim, 256), (256, 256), (256, 1)]         # head 2 (l4, l5, l6)
    keys = jax.random.split(key, len(dims))
    params = []
    for k, (din, dout) in zip(keys, dims):
        params.append(_orthogonal(k, din, dout))          # weight [in, out]
        params.append(jnp.zeros((1, dout), jnp.float32))  # bias (zero, like fill_(0.0))
    return tuple(params)


def _reference_forward(x, u, params):
    """Plain-JAX f32 reference matching the PyTorch forward."""
    xu = jnp.concatenate([x, u], axis=1)
    (w1, b1, w2, b2, w3, b3, w4, b4, w5, b5, w6, b6) = params
    h = jax.nn.relu(xu @ w1 + b1)
    h = jax.nn.relu(h @ w2 + b2)
    q1 = h @ w3 + b3
    g = jax.nn.relu(xu @ w4 + b4)
    g = jax.nn.relu(g @ w5 + b5)
    q2 = g @ w6 + b6
    return q1, q2


if __name__ == "__main__":
    key = jax.random.PRNGKey(0)
    k_x, k_u, k_p = jax.random.split(key, 3)

    batch, state_dim, action_dim = 8, 16, 8
    x = jax.random.normal(k_x, (batch, state_dim), dtype=jnp.float32)
    u = jax.random.normal(k_u, (batch, action_dim), dtype=jnp.float32)
    params = init_critic_params(k_p, state_dim, action_dim)

    # weight packing done ONCE, outside the per-call hot path
    packed = jax.tree_util.tree_map(jax.block_until_ready,
                                    pack_critic_params(params, state_dim))

    q1, q2 = critic_forward(x, u, packed)
    jax.block_until_ready((q1, q2))

    r1, r2 = _reference_forward(x, u, params)
    assert q1.shape == (batch, 1) and q2.shape == (batch, 1)
    # bf16 MXU inputs with f32 accumulation -> relaxed tolerance vs f32 reference
    assert jnp.allclose(q1, r1, atol=5e-2, rtol=5e-2)
    assert jnp.allclose(q2, r2, atol=5e-2, rtol=5e-2)

    print("KERNEL_OK")
</pallas_src>

<mosaic_0001>
module attributes {stable_mosaic.version = 11 : i64} {
  func.func @_critic_kernel(%arg0: i32, %arg1: memref<8x16xf32, #tpu.memory_space<vmem>>, %arg2: memref<8x8xf32, #tpu.memory_space<vmem>>, %arg3: memref<16x512xbf16, #tpu.memory_space<vmem>>, %arg4: memref<8x512xbf16, #tpu.memory_space<vmem>>, %arg5: memref<1x512xf32, #tpu.memory_space<vmem>>, %arg6: memref<256x256xbf16, #tpu.memory_space<vmem>>, %arg7: memref<1x256xf32, #tpu.memory_space<vmem>>, %arg8: memref<256x256xbf16, #tpu.memory_space<vmem>>, %arg9: memref<1x256xf32, #tpu.memory_space<vmem>>, %arg10: memref<1x512xf32, #tpu.memory_space<vmem>>, %arg11: memref<2xf32, #tpu.memory_space<smem>>, %arg12: memref<8x2xf32, #tpu.memory_space<vmem>>) attributes {dimension_semantics = [#tpu.dimension_semantics<parallel>], iteration_bounds = array<i64: 1>, scalar_prefetch = 0 : i64, scratch_operands = 0 : i64, tpu.core_type = #tpu.core_type<tc>, window_params = [{transform_indices = @transform_0, window_bounds = array<i64: 8, 16>}, {transform_indices = @transform_1, window_bounds = array<i64: 8, 8>}, {pipeline_mode = #tpu.pipeline_mode<synchronous>, transform_indices = @transform_2, window_bounds = array<i64: 16, 512>}, {pipeline_mode = #tpu.pipeline_mode<synchronous>, transform_indices = @transform_3, window_bounds = array<i64: 8, 512>}, {pipeline_mode = #tpu.pipeline_mode<synchronous>, transform_indices = @transform_4, window_bounds = array<i64: 1, 512>}, {pipeline_mode = #tpu.pipeline_mode<synchronous>, transform_indices = @transform_5, window_bounds = array<i64: 256, 256>}, {pipeline_mode = #tpu.pipeline_mode<synchronous>, transform_indices = @transform_6, window_bounds = array<i64: 1, 256>}, {pipeline_mode = #tpu.pipeline_mode<synchronous>, transform_indices = @transform_7, window_bounds = array<i64: 256, 256>}, {pipeline_mode = #tpu.pipeline_mode<synchronous>, transform_indices = @transform_8, window_bounds = array<i64: 1, 256>}, {pipeline_mode = #tpu.pipeline_mode<synchronous>, transform_indices = @transform_9, window_bounds = array<i64: 1, 512>}, {transform_indices = @transform_10, window_bounds = array<i64: 2>}, {transform_indices = @transform_11, window_bounds = array<i64: 8, 2>}]} {
    %c0 = arith.constant 0 : index
    %c0_0 = arith.constant 0 : index
    %0 = vector.load %arg1[%c0, %c0_0] : memref<8x16xf32, #tpu.memory_space<vmem>>, vector<8x16xf32>
    %1 = arith.truncf %0 : vector<8x16xf32> to vector<8x16xbf16>
    %c0_1 = arith.constant 0 : index
    %c0_2 = arith.constant 0 : index
    %2 = vector.load %arg2[%c0_1, %c0_2] : memref<8x8xf32, #tpu.memory_space<vmem>>, vector<8x8xf32>
    %3 = arith.truncf %2 : vector<8x8xf32> to vector<8x8xbf16>
    %c0_3 = arith.constant 0 : index
    %c0_4 = arith.constant 0 : index
    %4 = vector.load %arg3[%c0_3, %c0_4] : memref<16x512xbf16, #tpu.memory_space<vmem>>, vector<16x512xbf16>
    %cst = arith.constant dense<0.000000e+00> : vector<8x512xf32>
    %5 = tpu.matmul %1, %4, %cst {dimension_numbers = #tpu.dot_dimension_numbers<[1], [0], [0], [1], [0, 0, 1, 1], [], []>} : vector<8x16xbf16>, vector<16x512xbf16>, vector<8x512xf32> -> vector<8x512xf32>
    %c0_5 = arith.constant 0 : index
    %c0_6 = arith.constant 0 : index
    %6 = vector.load %arg4[%c0_5, %c0_6] : memref<8x512xbf16, #tpu.memory_space<vmem>>, vector<8x512xbf16>
    %cst_7 = arith.constant dense<0.000000e+00> : vector<8x512xf32>
    %7 = tpu.matmul %3, %6, %cst_7 {dimension_numbers = #tpu.dot_dimension_numbers<[1], [0], [0], [1], [0, 0, 1, 1], [], []>} : vector<8x8xbf16>, vector<8x512xbf16>, vector<8x512xf32> -> vector<8x512xf32>
    %8 = arith.addf %5, %7 : vector<8x512xf32>
    %c0_8 = arith.constant 0 : index
    %c0_9 = arith.constant 0 : index
    %9 = vector.load %arg5[%c0_8, %c0_9] : memref<1x512xf32, #tpu.memory_space<vmem>>, vector<1x512xf32>
    %10 = vector.broadcast %9 : vector<1x512xf32> to vector<8x512xf32>
    %11 = arith.addf %8, %10 : vector<8x512xf32>
    %cst_10 = arith.constant 0.000000e+00 : f32
    %12 = vector.broadcast %cst_10 : f32 to vector<8x512xf32>
    %13 = arith.maximumf %11, %12 : vector<8x512xf32>
    %14 = vector.extract_strided_slice %13 {offsets = [0, 0], sizes = [8, 256], strides = [1, 1]} : vector<8x512xf32> to vector<8x256xf32>
    %15 = arith.truncf %14 : vector<8x256xf32> to vector<8x256xbf16>
    %16 = vector.extract_strided_slice %13 {offsets = [0, 256], sizes = [8, 256], strides = [1, 1]} : vector<8x512xf32> to vector<8x256xf32>
    %17 = arith.truncf %16 : vector<8x256xf32> to vector<8x256xbf16>
    %c0_11 = arith.constant 0 : index
    %c0_12 = arith.constant 0 : index
    %18 = vector.load %arg6[%c0_11, %c0_12] : memref<256x256xbf16, #tpu.memory_space<vmem>>, vector<256x256xbf16>
    %cst_13 = arith.constant dense<0.000000e+00> : vector<8x256xf32>
    %19 = tpu.matmul %15, %18, %cst_13 {dimension_numbers = #tpu.dot_dimension_numbers<[1], [0], [0], [1], [0, 0, 1, 1], [], []>} : vector<8x256xbf16>, vector<256x256xbf16>, vector<8x256xf32> -> vector<8x256xf32>
    %c0_14 = arith.constant 0 : index
    %c0_15 = arith.constant 0 : index
    %20 = vector.load %arg7[%c0_14, %c0_15] : memref<1x256xf32, #tpu.memory_space<vmem>>, vector<1x256xf32>
    %21 = vector.broadcast %20 : vector<1x256xf32> to vector<8x256xf32>
    %22 = arith.addf %19, %21 : vector<8x256xf32>
    %cst_16 = arith.constant 0.000000e+00 : f32
    %23 = vector.broadcast %cst_16 : f32 to vector<8x256xf32>
    %24 = arith.maximumf %22, %23 : vector<8x256xf32>
    %c0_17 = arith.constant 0 : index
    %c0_18 = arith.constant 0 : index
    %25 = vector.load %arg8[%c0_17, %c0_18] : memref<256x256xbf16, #tpu.memory_space<vmem>>, vector<256x256xbf16>
    %cst_19 = arith.constant dense<0.000000e+00> : vector<8x256xf32>
    %26 = tpu.matmul %17, %25, %cst_19 {dimension_numbers = #tpu.dot_dimension_numbers<[1], [0], [0], [1], [0, 0, 1, 1], [], []>} : vector<8x256xbf16>, vector<256x256xbf16>, vector<8x256xf32> -> vector<8x256xf32>
    %c0_20 = arith.constant 0 : index
    %c0_21 = arith.constant 0 : index
    %27 = vector.load %arg9[%c0_20, %c0_21] : memref<1x256xf32, #tpu.memory_space<vmem>>, vector<1x256xf32>
    %28 = vector.broadcast %27 : vector<1x256xf32> to vector<8x256xf32>
    %29 = arith.addf %26, %28 : vector<8x256xf32>
    %cst_22 = arith.constant 0.000000e+00 : f32
    %30 = vector.broadcast %cst_22 : f32 to vector<8x256xf32>
    %31 = arith.maximumf %29, %30 : vector<8x256xf32>
    %c0_23 = arith.constant 0 : index
    %c0_24 = arith.constant 0 : index
    %32 = vector.load %arg10[%c0_23, %c0_24] : memref<1x512xf32, #tpu.memory_space<vmem>>, vector<1x256xf32>
    %c0_25 = arith.constant 0 : index
    %c256 = arith.constant 256 : index
    %33 = vector.load %arg10[%c0_25, %c256] : memref<1x512xf32, #tpu.memory_space<vmem>>, vector<1x256xf32>
    %34 = vector.broadcast %32 : vector<1x256xf32> to vector<8x256xf32>
    %35 = arith.mulf %24, %34 : vector<8x256xf32>
    %cst_26 = arith.constant dense<0.000000e+00> : vector<8xf32>
    %36 = vector.multi_reduction <add>, %35, %cst_26 [1] : vector<8x256xf32> to vector<8xf32>
    %37 = vector.shape_cast %36 : vector<8xf32> to vector<8x1xf32>
    %c0_27 = arith.constant 0 : index
    %38 = memref.load %arg11[%c0_27] : memref<2xf32, #tpu.memory_space<smem>>
    %39 = vector.broadcast %38 : f32 to vector<8x1xf32>
    %40 = arith.addf %37, %39 : vector<8x1xf32>
    %41 = vector.broadcast %33 : vector<1x256xf32> to vector<8x256xf32>
    %42 = arith.mulf %31, %41 : vector<8x256xf32>
    %cst_28 = arith.constant dense<0.000000e+00> : vector<8xf32>
    %43 = vector.multi_reduction <add>, %42, %cst_28 [1] : vector<8x256xf32> to vector<8xf32>
    %44 = vector.shape_cast %43 : vector<8xf32> to vector<8x1xf32>
    %c1 = arith.constant 1 : index
    %45 = memref.load %arg11[%c1] : memref<2xf32, #tpu.memory_space<smem>>
    %46 = vector.broadcast %45 : f32 to vector<8x1xf32>
    %47 = arith.addf %44, %46 : vector<8x1xf32>
    %48 = tpu.concatenate %40, %47 in 1 : vector<8x1xf32>, vector<8x1xf32> -> vector<8x2xf32>
    %c0_29 = arith.constant 0 : index
    %c0_30 = arith.constant 0 : index
    %49 = vector.load %arg12[%c0_29, %c0_30] : memref<8x2xf32, #tpu.memory_space<vmem>>, vector<8x2xf32>
    tpu.vector_store %arg12[%c0_29, %c0_30], %48 {strides = array<i32>} : memref<8x2xf32, #tpu.memory_space<vmem>>, vector<8x2xf32>,
    return
  }
  func.func @transform_0(%arg0: i32) -> (i32, i32) {
    %c0_i32 = arith.constant 0 : i32
    %c0_i32_0 = arith.constant 0 : i32
    return %arg0, %c0_i32 : i32, i32
  }
  func.func @transform_1(%arg0: i32) -> (i32, i32) {
    %c0_i32 = arith.constant 0 : i32
    %c0_i32_0 = arith.constant 0 : i32
    return %arg0, %c0_i32 : i32, i32
  }
  func.func @transform_2(%arg0: i32) -> (i32, i32) {
    %c0_i32 = arith.constant 0 : i32
    %c0_i32_0 = arith.constant 0 : i32
    %c0_i32_1 = arith.constant 0 : i32
    return %c0_i32, %c0_i32_0 : i32, i32
  }
  func.func @transform_3(%arg0: i32) -> (i32, i32) {
    %c0_i32 = arith.constant 0 : i32
    %c0_i32_0 = arith.constant 0 : i32
    %c0_i32_1 = arith.constant 0 : i32
    return %c0_i32, %c0_i32_0 : i32, i32
  }
  func.func @transform_4(%arg0: i32) -> (i32, i32) {
    %c0_i32 = arith.constant 0 : i32
    %c0_i32_0 = arith.constant 0 : i32
    %c0_i32_1 = arith.constant 0 : i32
    return %c0_i32, %c0_i32_0 : i32, i32
  }
  func.func @transform_5(%arg0: i32) -> (i32, i32) {
    %c0_i32 = arith.constant 0 : i32
    %c0_i32_0 = arith.constant 0 : i32
    %c0_i32_1 = arith.constant 0 : i32
    return %c0_i32, %c0_i32_0 : i32, i32
  }
  func.func @transform_6(%arg0: i32) -> (i32, i32) {
    %c0_i32 = arith.constant 0 : i32
    %c0_i32_0 = arith.constant 0 : i32
    %c0_i32_1 = arith.constant 0 : i32
    return %c0_i32, %c0_i32_0 : i32, i32
  }
  func.func @transform_7(%arg0: i32) -> (i32, i32) {
    %c0_i32 = arith.constant 0 : i32
    %c0_i32_0 = arith.constant 0 : i32
    %c0_i32_1 = arith.constant 0 : i32
    return %c0_i32, %c0_i32_0 : i32, i32
  }
  func.func @transform_8(%arg0: i32) -> (i32, i32) {
    %c0_i32 = arith.constant 0 : i32
    %c0_i32_0 = arith.constant 0 : i32
    %c0_i32_1 = arith.constant 0 : i32
    return %c0_i32, %c0_i32_0 : i32, i32
  }
  func.func @transform_9(%arg0: i32) -> (i32, i32) {
    %c0_i32 = arith.constant 0 : i32
    %c0_i32_0 = arith.constant 0 : i32
    %c0_i32_1 = arith.constant 0 : i32
    return %c0_i32, %c0_i32_0 : i32, i32
  }
  func.func @transform_10(%arg0: i32) -> i32 {
    %c0_i32 = arith.constant 0 : i32
    %c0_i32_0 = arith.constant 0 : i32
    return %c0_i32 : i32
  }
  func.func @transform_11(%arg0: i32) -> (i32, i32) {
    %c0_i32 = arith.constant 0 : i32
    %c0_i32_0 = arith.constant 0 : i32
    return %arg0, %c0_i32 : i32, i32
  }
}

</mosaic_0001>

<bundles_post_ra>
// kernel: critic_forward.1
= control target key start
LH: loop header
LB: loop body
LE: loop exit
PB: predicated region body
PF: predicated region fallthrough
CT: control target
= control target key end

     0   :  { %16 = vsyncpa [#allocation3], 0  ;;  %s1398_s0 = inlined_call_operand.hbm [shape: f32[8,16], index: 0, kind: input, shape index: {}]   ;;  %s1399_s1 = inlined_call_operand.hbm [shape: f32[8,8], index: 1, kind: input, shape index: {}]   ;;  %s1400_s2 = inlined_call_operand.hbm [shape: bf16[16,512], index: 2, kind: input, shape index: {}]   ;;  %s1401_s3 = inlined_call_operand.hbm [shape: bf16[8,512], index: 3, kind: input, shape index: {}]   ;;  %s1402_s4 = inlined_call_operand.vmem [shape: f32[1,512], index: 4, kind: input, shape index: {}]   ;;  %s1403_s5 = inlined_call_operand.hbm [shape: bf16[256,256], index: 5, kind: input, shape index: {}]   ;;  %s1404_s6 = inlined_call_operand.vmem [shape: f32[1,256], index: 6, kind: input, shape index: {}]   ;;  %s1405_s7 = inlined_call_operand.hbm [shape: bf16[256,256], index: 7, kind: input, shape index: {}]   ;;  %s1406_s8 = inlined_call_operand.vmem [shape: f32[1,256], index: 8, kind: input, shape index: {}]   ;;  %s1407_s9 = inlined_call_operand.vmem [shape: f32[1,512], index: 9, kind: input, shape index: {}]   ;;  %s1408_s10 = inlined_call_operand.vmem [shape: f32[2], index: 10, kind: input, shape index: {}]   ;;  %s1409_s11 = inlined_call_operand.vmem [shape: f32[8,2], index: 11, kind: output, shape index: {}]  }
   0x1   :  { %17 = vsyncpa [#allocation6], 0 }
   0x2   :  { %18 = vsyncpa [#allocation9], 0 }
   0x3   :  { %19 = vsyncpa [#allocation12], 0 }
   0x4   :  { %20 = vsyncpa [#allocation4], 0  ;;  %s1273_s17 = smov [#allocation5]   ;;  %s1274_s19 = smov [#allocation8]  }
   0x5   :  { %s37_s18 = sshll.u32 %s1273_s17, 4  ;;  %s59_s20 = sshll.u32 %s1274_s19, 4  ;;  %s38_s18 = int_to_ptr.vmem [resolvable:$true] %s37_s18  ;;  %s60_s20 = int_to_ptr.vmem [resolvable:$true] %s59_s20 }
   0x6   :  { %s1139_s21 = scalar_lea.vmem %s38_s18, 128  ;;  %p1144_p1 = scmp.lt.s32.totalorder %s38_s18, %s38_s18 }
   0x7   :  { %p1140_p0 = scmp.ne.s32.totalorder %s38_s18, %s1139_s21  ;;  %p1145_p2 = scmp.lt.s32.totalorder %s1139_s21, %s1139_s21 }
   0x9   :  { %p1146_p3 = por %p1145_p2, %p1144_p1 }
   0xb   :  { %p1147_p4 = pnand %p1146_p3, %p1140_p0 }
   0xd   :  { %1150 = shalt.err (!%p1147_p4)
}
   0xe   :  { %40 = dma.hbm_to_vmem [thread:$0]  %s1399_s1, 128, %s38_s18, [#allocation6]  }
   0xf   :  { %s1159_s24 = scalar_lea.vmem %s60_s20, 256  ;;  %p1164_p6 = scmp.lt.s32.totalorder %s60_s20, %s60_s20 }
  0x10   :  { %p1160_p5 = scmp.ne.s32.totalorder %s60_s20, %s1159_s24  ;;  %p1165_p7 = scmp.lt.s32.totalorder %s1159_s24, %s1159_s24 }
  0x12   :  { %p1166_p8 = por %p1165_p7, %p1164_p6 }
  0x14   :  { %p1167_p9 = pnand %p1166_p8, %p1160_p5 }
  0x16   :  { %1170 = shalt.err (!%p1167_p9)
}
  0x17   :  { %62 = dma.hbm_to_vmem [thread:$0]  %s1401_s3, 256, %s60_s20, [#allocation9]  }
  0x18   :  { %s1275_s27 = smov [#allocation2]   ;;  %s1276_s29 = smov [#allocation7]  }
  0x19   :  { %s27_s28 = sshll.u32 %s1275_s27, 4  ;;  %s46_s30 = sshll.u32 %s1276_s29, 4  ;;  %s28_s28 = int_to_ptr.vmem [resolvable:$true] %s27_s28  ;;  %s47_s30 = int_to_ptr.vmem [resolvable:$true] %s46_s30 }
  0x1a   :  { %s1179_s12 = scalar_lea.vmem %s28_s28, 128  ;;  %p1184_p11 = scmp.lt.s32.totalorder %s28_s28, %s28_s28 }
  0x1b   :  { %p1180_p10 = scmp.ne.s32.totalorder %s28_s28, %s1179_s12  ;;  %p1185_p12 = scmp.lt.s32.totalorder %s1179_s12, %s1179_s12 }
  0x1d   :  { %p1186_p13 = por %p1185_p12, %p1184_p11 }
  0x1f   :  { %p1187_p0 = pnand %p1186_p13, %p1180_p10 }
  0x21   :  { %1190 = shalt.err (!%p1187_p0)
}
  0x22   :  { %30 = dma.hbm_to_vmem [thread:$0]  %s1398_s0, 128, %s28_s28, [#allocation3]  }
  0x23   :  { %s1199_s14 = scalar_lea.vmem %s47_s30, 512  ;;  %p1204_p2 = scmp.lt.s32.totalorder %s47_s30, %s47_s30 }
  0x24   :  { %p1200_p1 = scmp.ne.s32.totalorder %s47_s30, %s1199_s14  ;;  %p1205_p3 = scmp.lt.s32.totalorder %s1199_s14, %s1199_s14 }
  0x26   :  { %p1206_p4 = por %p1205_p3, %p1204_p2 }
  0x28   :  { %p1207_p5 = pnand %p1206_p4, %p1200_p1 }
  0x2a   :  { %1210 = shalt.err (!%p1207_p5)
}
  0x2b   :  { %s1277_s3 = smov 256   ;;  %s1278_s15 = smov 16  }
  0x2c   :  { %52 = dma.hbm_to_vmem [thread:$0]  %s1400_s2, 512, %s47_s30, [#allocation6], %s1277_s3, %s1277_s3, %s1278_s15  }
  0x2d   :  { %s1279_s18 = smov [#allocation10]  }
  0x2e   :  { %s70_s19 = sshll.u32 %s1279_s18, 4  ;;  %s71_s19 = int_to_ptr.vmem [resolvable:$true] %s70_s19 }
  0x2f   :  { %s1219_s20 = scalar_lea.vmem %s71_s19, 4096  ;;  %p1224_p7 = scmp.lt.s32.totalorder %s71_s19, %s71_s19 }
  0x30   :  { %p1220_p6 = scmp.ne.s32.totalorder %s71_s19, %s1219_s20  ;;  %p1225_p8 = scmp.lt.s32.totalorder %s1219_s20, %s1219_s20 }
  0x32   :  { %p1226_p9 = por %p1225_p8, %p1224_p7 }
  0x34   :  { %p1227_p10 = pnand %p1226_p9, %p1220_p6 }
  0x36   :  { %1230 = shalt.err (!%p1227_p10)
}
  0x37   :  { %s1280_s0 = smov 128   ;;  %s1281_s21 = smov 8  }
  0x38   :  { %76 = dma.hbm_to_vmem [thread:$0]  %s1403_s5, 4096, %s71_s19, [#allocation9], %s1280_s0, %s1280_s0, %s1281_s21  }
  0x39   :  { %s1282_s24 = smov [#allocation11]   ;;  %s101_s27 = sshll.u32 %s1408_s10, 4  ;;  %s102_s27 = int_to_ptr.vmem [resolvable:$true] %s101_s27 }
  0x3a   :  { %s84_s25 = sshll.u32 %s1282_s24, 4  ;;  %s85_s25 = int_to_ptr.vmem [resolvable:$true] %s84_s25 }
  0x3b   :  { %s1239_s28 = scalar_lea.vmem %s85_s25, 4096  ;;  %p1244_p12 = scmp.lt.s32.totalorder %s85_s25, %s85_s25 }
  0x3c   :  { %p1240_p11 = scmp.ne.s32.totalorder %s85_s25, %s1239_s28  ;;  %p1245_p13 = scmp.lt.s32.totalorder %s1239_s28, %s1239_s28 }
  0x3e   :  { %p1246_p0 = por %p1245_p13, %p1244_p12 }
  0x40   :  { %p1247_p1 = pnand %p1246_p0, %p1240_p11 }
  0x42   :  { %1250 = shalt.err (!%p1247_p1)
}
  0x43   :  { %90 = dma.hbm_to_vmem [thread:$0]  %s1405_s7, 4096, %s85_s25, [#allocation12], %s1280_s0, %s1280_s0, %s1281_s21  }
  0x44   :  { %s1251_s5 = scalar_lea.vmem %s102_s27, 16  ;;  %p1256_p3 = scmp.lt.s32.totalorder %s102_s27, %s102_s27 }
  0x45   :  { %p1252_p2 = scmp.ne.s32.totalorder %s102_s27, %s1251_s5  ;;  %p1257_p4 = scmp.lt.s32.totalorder %s1251_s5, %s1251_s5 }
  0x47   :  { %p1258_p5 = por %p1257_p4, %p1256_p3 }
  0x49   :  { %p1259_p6 = pnand %p1258_p5, %p1252_p2 }
  0x4b   :  { %1262 = shalt.err (!%p1259_p6)
}
  0x4c   :  { %s1283_s10 = smov [#allocation13]  }
  0x4d   :  { %104 = dma.vmem_to_smem %s102_s27, 16, %s1283_s10, [#allocation4]  }
  0x4e   :  { %1263 = dma.done.wait [#allocation3], 128  }
  0x4f   :  { %1264 = vsyncadd [#allocation3], 4294967168 }
  0x50   :  { %1265 = dma.done.wait [#allocation6], 640  }
  0x51   :  { %1266 = vsyncadd [#allocation6], 4294966656 }
  0x52   :  { %1267 = dma.done.wait [#allocation9], 4352  }
  0x53   :  { %1268 = vsyncadd [#allocation9], 4294962944 }
  0x54   :  { %1269 = dma.done.wait [#allocation12], 4096  }
  0x55   :  { %1270 = vsyncadd [#allocation12], 4294963200 }
  0x56   :  { %1271 = dma.done.wait [#allocation4], 16  }
  0x57   :  { %1272 = vsyncadd [#allocation4], 4294967280 }
  0x58   :  { %126 = sfence }
  0x59   :  { %v136_v0 = vld [vmem:[#allocation8] sm:$0xff]  ;;  %vm152_vm0 = vcmask 1043456   ;;  %v137_v1 = vld [vmem:[#allocation8 + $0x8] sm:$0xff]  ;;  %v130_v2 = vld [vmem:[#allocation5] sm:$0xff]  ;;  %v1284_v7 = vmov 0   ;;  %vm148_vm1 = vcmask 64512  }
  0x5a   :  { %v935_v3 = vcombine.high %v136_v0, %v136_v0  ;;  %v937_v4 = vcombine.high %v137_v1, %v137_v1  ;;  %v934_v5 = vcombine.low %v136_v0, %v136_v0  ;;  %v936_v6 = vcombine.low %v137_v1, %v137_v1  ;;  %197 = vmatprep.mubr.bf16.mxu0 %v1284_v7  ;;  %v1031_v8 = vld [vmem:[#allocation7 + $0x4] ss:$16 sps:$4 sm:$0xff]   ;;  %v1029_v12 = vld [vmem:[#allocation7] ss:$16 sps:$4 sm:$0xff]   ;;  %v1034_v13 = vld [vmem:[#allocation7 + $0xc] ss:$16 sps:$4 sm:$0xff]  }
  0x5b   :  { %238 = vmatprep.mubr.bf16.mxu1 %v1284_v7  ;;  %v131_v11 = vpack.c.bf16 %v130_v2, %v130_v2  ;;  %v1032_v14 = vld [vmem:[#allocation7 + $0x8] ss:$16 sps:$4 sm:$0xff]   ;;  %v1037_v15 = vld [vmem:[#allocation10 + $0x74] ss:$8 sps:$4 sm:$0xff]   ;;  %v128_v17 = vld [vmem:[#allocation2] sm:$0xff]  ;;  %vm267_vm2 = vcmask 130048  }
  0x5c   :  { %938 = vmatprep.subr.msk.bf16.mxu0 %vm152_vm0, %v935_v3  ;;  %940 = vmatprep.subr.msk.bf16.mxu1 %vm152_vm0, %v937_v4  ;;  %v154_v9 = vsel %vm152_vm0, %v934_v5, 0  ;;  %v160_v10 = vsel %vm152_vm0, %v936_v6, 0  ;;  %v1040_v16 = vld [vmem:[#allocation11 + $0x74] ss:$8 sps:$4 sm:$0xff]   ;;  %v129_v18 = vpack.c.bf16 %v128_v17, %v128_v17  ;;  %v1035_v19 = vld [vmem:[#allocation10 + $0x70] ss:$8 sps:$4 sm:$0xff]   ;;  %v355_v17 = vlaneseq }
  0x5d   :  { %180 = vmatpush1.bf16.msra.mxu0 %v154_v9  ;;  %221 = vmatpush1.bf16.msra.mxu1 %v160_v10  ;;  %v1038_v20 = vld [vmem:[#allocation11 + $0x70] ss:$8 sps:$4 sm:$0xff]   ;;  %v1043_v21 = vld [vmem:[#allocation10 + $0x64] ss:$8 sps:$4 sm:$0xff]   ;;  %v1041_v23 = vld [vmem:[#allocation10 + $0x60] ss:$8 sps:$4 sm:$0xff]  }
  0x5e   :  { %285 = vmatprep.subr.bf16.mxu0 %v1031_v8  ;;  %326 = vmatprep.subr.bf16.mxu1 %v1034_v13  ;;  %v1046_v22 = vld [vmem:[#allocation11 + $0x64] ss:$8 sps:$4 sm:$0xff]   ;;  %v1044_v24 = vld [vmem:[#allocation11 + $0x60] ss:$8 sps:$4 sm:$0xff]   ;;  %v1049_v25 = vld [vmem:[#allocation10 + $0x54] ss:$8 sps:$4 sm:$0xff]  }
  0x5f   :  { %v1052_v26 = vld [vmem:[#allocation11 + $0x54] ss:$8 sps:$4 sm:$0xff]   ;;  %v1047_v27 = vld [vmem:[#allocation10 + $0x50] ss:$8 sps:$4 sm:$0xff]   ;;  %v1055_v29 = vld [vmem:[#allocation10 + $0x44] ss:$8 sps:$4 sm:$0xff]  }
  0x60   :  { %939 = vmatmul.mubr.msk.bf16.vlgmr.msra.gmra.mxu0 %vm148_vm1, %v131_v11  ;;  %941 = vmatmul.mubr.msk.bf16.vlgmr.msra.gmra.mxu1 %vm148_vm1, %v131_v11  ;;  %v1050_v28 = vld [vmem:[#allocation11 + $0x50] ss:$8 sps:$4 sm:$0xff]   ;;  %v1058_v30 = vld [vmem:[#allocation11 + $0x44] ss:$8 sps:$4 sm:$0xff]   ;;  %v1053_v31 = vld [vmem:[#allocation10 + $0x40] ss:$8 sps:$4 sm:$0xff]  }
  0x61   :  { %286 = vmatpush1.bf16.msra.mxu0 %v1029_v12  ;;  %327 = vmatpush1.bf16.msra.mxu1 %v1032_v14  ;;  %v1056_v32 = vld [vmem:[#allocation11 + $0x40] ss:$8 sps:$4 sm:$0xff]   ;;  %v1061_v33 = vld [vmem:[#allocation10 + $0x34] ss:$8 sps:$4 sm:$0xff]   ;;  %v1059_v35 = vld [vmem:[#allocation10 + $0x30] ss:$8 sps:$4 sm:$0xff]  }
  0x62   :  { %303 = vmatprep.mubr.bf16.mxu0 %v1284_v7  ;;  %344 = vmatprep.mubr.bf16.mxu1 %v1284_v7  ;;  %v1064_v34 = vld [vmem:[#allocation11 + $0x34] ss:$8 sps:$4 sm:$0xff]   ;;  %v1062_v36 = vld [vmem:[#allocation11 + $0x30] ss:$8 sps:$4 sm:$0xff]   ;;  %v1067_v37 = vld [vmem:[#allocation10 + $0x24] ss:$8 sps:$4 sm:$0xff]  }
  0x63   :  { %591 = vmatprep.subr.bf16.mxu0 %v1037_v15  ;;  %838 = vmatprep.subr.bf16.mxu1 %v1040_v16  ;;  %v1070_v38 = vld [vmem:[#allocation11 + $0x24] ss:$8 sps:$4 sm:$0xff]   ;;  %v1065_v39 = vld [vmem:[#allocation10 + $0x20] ss:$8 sps:$4 sm:$0xff]   ;;  %v1073_v41 = vld [vmem:[#allocation10 + $0x14] ss:$8 sps:$4 sm:$0xff]  }
  0x64   :  { %v1068_v40 = vld [vmem:[#allocation11 + $0x20] ss:$8 sps:$4 sm:$0xff]   ;;  %v1076_v42 = vld [vmem:[#allocation11 + $0x14] ss:$8 sps:$4 sm:$0xff]   ;;  %v1071_v43 = vld [vmem:[#allocation10 + $0x10] ss:$8 sps:$4 sm:$0xff]  }
  0x65   :  { %v1074_v44 = vld [vmem:[#allocation11 + $0x10] ss:$8 sps:$4 sm:$0xff]   ;;  %v1079_v45 = vld [vmem:[#allocation10 + $0x4] ss:$8 sps:$4 sm:$0xff]   ;;  %v1077_v47 = vld [vmem:[#allocation10] ss:$8 sps:$4 sm:$0xff]  }
  0x66   :  { %v1082_v46 = vld [vmem:[#allocation11 + $0x4] ss:$8 sps:$4 sm:$0xff]   ;;  %v1080_v48 = vld [vmem:[#allocation11] ss:$8 sps:$4 sm:$0xff]   ;;  %v1085_v49 = vld [vmem:[#allocation10 + $0xf4] ss:$8 sps:$4 sm:$0xff]  }
  0x67   :  { %v1088_v50 = vld [vmem:[#allocation11 + $0xf4] ss:$8 sps:$4 sm:$0xff]   ;;  %v1083_v51 = vld [vmem:[#allocation10 + $0xf0] ss:$8 sps:$4 sm:$0xff]   ;;  %v1091_v53 = vld [vmem:[#allocation10 + $0xe4] ss:$8 sps:$4 sm:$0xff]  }
  0x68   :  { %946 = vmatmul.mubr.msk.bf16.vlgmr.msra.gmra.mxu0 %vm267_vm2, %v129_v18  ;;  %947 = vmatmul.mubr.msk.bf16.vlgmr.msra.gmra.mxu1 %vm267_vm2, %v129_v18  ;;  %v1086_v52 = vld [vmem:[#allocation11 + $0xf0] ss:$8 sps:$4 sm:$0xff]   ;;  %v1094_v54 = vld [vmem:[#allocation11 + $0xe4] ss:$8 sps:$4 sm:$0xff]   ;;  %v1089_v55 = vld [vmem:[#allocation10 + $0xe0] ss:$8 sps:$4 sm:$0xff]  }
  0x69   :  { %592 = vmatpush1.bf16.msra.mxu0 %v1035_v19  ;;  %839 = vmatpush1.bf16.msra.mxu1 %v1038_v20  ;;  %v1092_v56 = vld [vmem:[#allocation11 + $0xe0] ss:$8 sps:$4 sm:$0xff]   ;;  %v1097_v57 = vld [vmem:[#allocation10 + $0xd4] ss:$8 sps:$4 sm:$0xff]   ;;  %v1095_v59 = vld [vmem:[#allocation10 + $0xd0] ss:$8 sps:$4 sm:$0xff]  }
  0x6a   :  { %593 = vmatprep.subr.bf16.mxu0 %v1043_v21  ;;  %840 = vmatprep.subr.bf16.mxu1 %v1046_v22  ;;  %v1100_v58 = vld [vmem:[#allocation11 + $0xd4] ss:$8 sps:$4 sm:$0xff]   ;;  %v1098_v60 = vld [vmem:[#allocation11 + $0xd0] ss:$8 sps:$4 sm:$0xff]   ;;  %v1103_v61 = vld [vmem:[#allocation10 + $0xc4] ss:$8 sps:$4 sm:$0xff]  }
  0x6b   :  { %v1106_v62 = vld [vmem:[#allocation11 + $0xc4] ss:$8 sps:$4 sm:$0xff]   ;;  %v1101_v63 = vld [vmem:[#allocation10 + $0xc0] ss:$8 sps:$4 sm:$0xff]   ;;  %v1109_v1 = vld [vmem:[#allocation10 + $0xb4] ss:$8 sps:$4 sm:$0xff]  }
  0x6c   :  { %v1104_v0 = vld [vmem:[#allocation11 + $0xc0] ss:$8 sps:$4 sm:$0xff]   ;;  %v1112_v2 = vld [vmem:[#allocation11 + $0xb4] ss:$8 sps:$4 sm:$0xff]   ;;  %v1107_v3 = vld [vmem:[#allocation10 + $0xb0] ss:$8 sps:$4 sm:$0xff]  }
  0x6d   :  { %594 = vmatpush1.bf16.msra.mxu0 %v1041_v23  ;;  %841 = vmatpush1.bf16.msra.mxu1 %v1044_v24  ;;  %v1110_v4 = vld [vmem:[#allocation11 + $0xb0] ss:$8 sps:$4 sm:$0xff]   ;;  %v1115_v5 = vld [vmem:[#allocation10 + $0xa4] ss:$8 sps:$4 sm:$0xff]   ;;  %v1113_v7 = vld [vmem:[#allocation10 + $0xa0] ss:$8 sps:$4 sm:$0xff]  }
  0x6e   :  { %595 = vmatprep.subr.bf16.mxu0 %v1049_v25  ;;  %842 = vmatprep.subr.bf16.mxu1 %v1052_v26  ;;  %v1118_v6 = vld [vmem:[#allocation11 + $0xa4] ss:$8 sps:$4 sm:$0xff]   ;;  %v1116_v8 = vld [vmem:[#allocation11 + $0xa0] ss:$8 sps:$4 sm:$0xff]   ;;  %v1121_v9 = vld [vmem:[#allocation10 + $0x94] ss:$8 sps:$4 sm:$0xff]  }
  0x6f   :  { %v1124_v10 = vld [vmem:[#allocation11 + $0x94] ss:$8 sps:$4 sm:$0xff]   ;;  %v1119_v11 = vld [vmem:[#allocation10 + $0x90] ss:$8 sps:$4 sm:$0xff]   ;;  %v1127_v13 = vld [vmem:[#allocation10 + $0x84] ss:$8 sps:$4 sm:$0xff]  }
  0x70   :  { %v1122_v12 = vld [vmem:[#allocation11 + $0x90] ss:$8 sps:$4 sm:$0xff]   ;;  %v1130_v14 = vld [vmem:[#allocation11 + $0x84] ss:$8 sps:$4 sm:$0xff]   ;;  %v1125_v15 = vld [vmem:[#allocation10 + $0x80] ss:$8 sps:$4 sm:$0xff]  }
  0x71   :  { %596 = vmatpush1.bf16.msra.mxu0 %v1047_v27  ;;  %843 = vmatpush1.bf16.msra.mxu1 %v1050_v28  ;;  %v1128_v16 = vld [vmem:[#allocation11 + $0x80] ss:$8 sps:$4 sm:$0xff]   ;;  %v356_v18 = vshrl.u32 %v355_v17, 7  ;;  %s1012_s16 = sld [smem:[#allocation13 + $0x1]]  ;;  %vm921_vm3 = vcmask 7168   ;;  %vm923_vm4 = vcmask 15360  }
  0x72   :  { %597 = vmatprep.subr.bf16.mxu0 %v1055_v29  ;;  %844 = vmatprep.subr.bf16.mxu1 %v1058_v30  ;;  %v353_v27 = vld [vmem:[%s1402_s4] sm:$0xf] }
  0x73   :  { %v1366_v23 = vsub.s32 0, %v356_v18  ;;  %v365_v24 = vsub.s32 2, %v356_v18  ;;  %v1371_v28 = vsub.s32 1, %v356_v18  ;;  %v369_v29 = vsub.s32 3, %v356_v18 }
  0x75   :  { %598 = vmatpush1.bf16.msra.mxu0 %v1053_v31  ;;  %845 = vmatpush1.bf16.msra.mxu1 %v1056_v32  ;;  %v358_v32 = vrot.slane %v353_v27, %v1366_v23 }
  0x76   :  { %599 = vmatprep.subr.bf16.mxu0 %v1061_v33  ;;  %846 = vmatprep.subr.bf16.mxu1 %v1064_v34  ;;  %v366_v33 = vrot.slane %v353_v27, %v365_v24 }
  0x79   :  { %600 = vmatpush1.bf16.msra.mxu0 %v1059_v35  ;;  %847 = vmatpush1.bf16.msra.mxu1 %v1062_v36 }
  0x7a   :  { %601 = vmatprep.subr.bf16.mxu0 %v1067_v37  ;;  %848 = vmatprep.subr.bf16.mxu1 %v1070_v38  ;;  %v362_v38 = vrot.slane %v353_v27, %v1371_v28 }
  0x7d   :  { %602 = vmatpush1.bf16.msra.mxu0 %v1065_v39  ;;  %849 = vmatpush1.bf16.msra.mxu1 %v1068_v40  ;;  %v370_v39 = vrot.slane %v353_v27, %v369_v29 }
  0x7e   :  { %603 = vmatprep.subr.bf16.mxu0 %v1073_v41  ;;  %850 = vmatprep.subr.bf16.mxu1 %v1076_v42 }
  0x81   :  { %604 = vmatpush1.bf16.msra.mxu0 %v1071_v43  ;;  %851 = vmatpush1.bf16.msra.mxu1 %v1074_v44 }
  0x82   :  { %605 = vmatprep.subr.bf16.mxu0 %v1079_v45  ;;  %852 = vmatprep.subr.bf16.mxu1 %v1082_v46 }
  0x85   :  { %606 = vmatpush1.bf16.msra.mxu0 %v1077_v47  ;;  %853 = vmatpush1.bf16.msra.mxu1 %v1080_v48 }
  0x86   :  { %607 = vmatprep.subr.bf16.mxu0 %v1085_v49  ;;  %854 = vmatprep.subr.bf16.mxu1 %v1088_v50 }
  0x89   :  { %608 = vmatpush2.bf16.msra.mxu0 %v1083_v51  ;;  %855 = vmatpush2.bf16.msra.mxu1 %v1086_v52 }
  0x8a   :  { %609 = vmatprep.subr.bf16.mxu0 %v1091_v53  ;;  %856 = vmatprep.subr.bf16.mxu1 %v1094_v54 }
  0x8d   :  { %610 = vmatpush2.bf16.msra.mxu0 %v1089_v55  ;;  %857 = vmatpush2.bf16.msra.mxu1 %v1092_v56 }
  0x8e   :  { %611 = vmatprep.subr.bf16.mxu0 %v1097_v57  ;;  %858 = vmatprep.subr.bf16.mxu1 %v1100_v58 }
  0x91   :  { %612 = vmatpush2.bf16.msra.mxu0 %v1095_v59  ;;  %859 = vmatpush2.bf16.msra.mxu1 %v1098_v60  ;;  %v419_v60 = vld [vmem:[%s1404_s6] sm:$0x3] }
  0x92   :  { %613 = vmatprep.subr.bf16.mxu0 %v1103_v61  ;;  %860 = vmatprep.subr.bf16.mxu1 %v1106_v62  ;;  %v666_v61 = vld [vmem:[%s1406_s8] sm:$0x3]  ;;  %v424_v62 = vrot.slane %v419_v60, %v1366_v23 }
  0x95   :  { %614 = vmatpush2.bf16.msra.mxu0 %v1101_v63  ;;  %861 = vmatpush2.bf16.msra.mxu1 %v1104_v0  ;;  %v671_v63 = vrot.slane %v666_v61, %v1366_v23  ;;  %v428_v0 = vrot.slane %v419_v60, %v1371_v28 }
  0x96   :  { %615 = vmatprep.subr.bf16.mxu0 %v1109_v1  ;;  %862 = vmatprep.subr.bf16.mxu1 %v1112_v2  ;;  %v675_v1 = vrot.slane %v666_v61, %v1371_v28  ;;  %v881_v2 = vld [vmem:[%s1407_s9] sm:$0x3] }
  0x99   :  { %616 = vmatpush2.bf16.msra.mxu0 %v1107_v3  ;;  %863 = vmatpush2.bf16.msra.mxu1 %v1110_v4 }
  0x9a   :  { %617 = vmatprep.subr.bf16.mxu0 %v1115_v5  ;;  %864 = vmatprep.subr.bf16.mxu1 %v1118_v6 }
  0x9d   :  { %618 = vmatpush2.bf16.msra.mxu0 %v1113_v7  ;;  %865 = vmatpush2.bf16.msra.mxu1 %v1116_v8  ;;  %v887_v8 = vrot.slane %v881_v2, %v1366_v23 }
  0x9e   :  { %619 = vmatprep.subr.bf16.mxu0 %v1121_v9  ;;  %866 = vmatprep.subr.bf16.mxu1 %v1124_v10  ;;  %v891_v9 = vrot.slane %v881_v2, %v1371_v28 }
  0xa1   :  { %620 = vmatpush2.bf16.msra.mxu0 %v1119_v11  ;;  %867 = vmatpush2.bf16.msra.mxu1 %v1122_v12 }
  0xa2   :  { %621 = vmatprep.subr.bf16.mxu0 %v1127_v13  ;;  %868 = vmatprep.subr.bf16.mxu1 %v1130_v14  ;;  %v882_v14 = vld [vmem:[%s1407_s9 + $0x2] sm:$0x3]  ;;  %s899_s9 = sld [smem:[#allocation13]] }
  0xa3   :  { %v906_v24 = vrot.slane %v882_v14, %v1366_v23 }
  0xa5   :  { %622 = vmatpush2.bf16.msra.mxu0 %v1125_v15  ;;  %869 = vmatpush2.bf16.msra.mxu1 %v1128_v16 }
 0x120   :  { %v199_v19 = vpop.f32.mrf.mxu0  ;;  %v240_v20 = vpop.f32.mrf.mxu1 }
 0x122   :  { %v201_v21 = vpop.f32.mrf.mxu0  ;;  %v242_v22 = vpop.f32.mrf.mxu1 }
 0x124   :  { %v203_v25 = vpop.f32.mrf.mxu0  ;;  %v244_v26 = vpop.f32.mrf.mxu1 }
 0x126   :  { %v204_v30 = vpop.f32.mrf.mxu0  ;;  %v245_v31 = vpop.f32.mrf.mxu1 }
 0x128   :  { %v305_v34 = vpop.f32.mrf.mxu0  ;;  %v346_v35 = vpop.f32.mrf.mxu1 }
 0x129   :  { %v306_v36 = vadd.f32 %v305_v34, %v199_v19  ;;  %v347_v37 = vadd.f32 %v346_v35, %v240_v20  ;;  %v910_v19 = vrot.slane %v882_v14, %v1371_v28  ;;  %v919_v34 = vstv %s1012_s16 }
 0x12a   :  { %v307_v40 = vpop.f32.mrf.mxu0  ;;  %v348_v41 = vpop.f32.mrf.mxu1 }
 0x12b   :  { %v375_v42 = vadd.f32 %v358_v32, %v306_v36  ;;  %v377_v43 = vadd.f32 %v366_v33, %v347_v37  ;;  %v308_v44 = vadd.f32 %v307_v40, %v201_v21  ;;  %v349_v45 = vadd.f32 %v348_v41, %v242_v22 }
 0x12c   :  { %v309_v46 = vpop.f32.mrf.mxu0  ;;  %v350_v47 = vpop.f32.mrf.mxu1  ;;  %v900_v33 = vstv %s899_s9 }
 0x12d   :  { %v376_v48 = vadd.f32 %v362_v38, %v308_v44  ;;  %v378_v49 = vadd.f32 %v370_v39, %v349_v45  ;;  %v379_v50 = vmax.f32 %v375_v42, 0.0  ;;  %v381_v51 = vmax.f32 %v377_v43, 0.0 }
 0x12e   :  { %v310_v52 = vpop.f32.mrf.mxu0  ;;  %v351_v53 = vpop.f32.mrf.mxu1 }
 0x12f   :  { %v380_v54 = vmax.f32 %v376_v48, 0.0  ;;  %v382_v55 = vmax.f32 %v378_v49, 0.0  ;;  %v383_v58 = vpack.c.bf16 %v379_v50, %v379_v50  ;;  %v385_v59 = vpack.c.bf16 %v381_v51, %v381_v51 }
 0x131   :  { %v384_v56 = vpack.c.bf16 %v380_v54, %v380_v54  ;;  %v386_v57 = vpack.c.bf16 %v382_v55, %v382_v55 }
 0x133   :  { %623 = vmatprep.mubr.bf16.mxu0 %v384_v56  ;;  %870 = vmatprep.mubr.bf16.mxu1 %v386_v57 }
 0x134   :  { %624 = vmatmul.mubr.bf16.vlgmr.msra.gmra.mxu0 %v383_v58  ;;  %871 = vmatmul.mubr.bf16.vlgmr.msra.gmra.mxu1 %v385_v59 }
 0x1f4   :  { %v625_v3 = vpop.f32.mrf.mxu0  ;;  %v872_v4 = vpop.f32.mrf.mxu1 }
 0x1f5   :  { %v626_v5 = vadd.f32 %v625_v3, %v424_v62  ;;  %v873_v11 = vadd.f32 %v872_v4, %v671_v63 }
 0x1f6   :  { %v627_v6 = vpop.f32.mrf.mxu0  ;;  %v874_v7 = vpop.f32.mrf.mxu1 }
 0x1f7   :  { %v632_v10 = vmax.f32 %v626_v5, 0.0  ;;  %v628_v12 = vadd.f32 %v627_v6, %v428_v0  ;;  %v875_v13 = vadd.f32 %v874_v7, %v675_v1  ;;  %v879_v22 = vmax.f32 %v873_v11, 0.0 }
 0x1f8   :  { %v629_v15 = vpop.f32.mrf.mxu0  ;;  %v876_v16 = vpop.f32.mrf.mxu1 }
 0x1f9   :  { %v633_v17 = vmax.f32 %v628_v12, 0.0  ;;  %v880_v18 = vmax.f32 %v875_v13, 0.0  ;;  %v894_v25 = vmul.f32 %v887_v8, %v632_v10  ;;  %v913_v30 = vmul.f32 %v906_v24, %v879_v22 }
 0x1fa   :  { %v630_v20 = vpop.f32.mrf.mxu0  ;;  %v877_v21 = vpop.f32.mrf.mxu1 }
 0x1fb   :  { %v895_v26 = vmul.f32 %v891_v9, %v633_v17  ;;  %v914_v27 = vmul.f32 %v910_v19, %v880_v18 }
 0x1fd   :  { %v896_v29 = vadd.f32 %v895_v26, %v894_v25  ;;  %v915_v31 = vadd.f32 %v914_v27, %v913_v30 }
 0x1ff   :  { %897 = vadd.xlane.f32.xlu0 %v896_v29 }
 0x203   :  { %916 = vadd.xlane.f32.xlu0 %v915_v31 }
 0x288   :  { %v898_v32 = vpop.xlane.xlu0 %897 }
 0x289   :  { %v901_v35 = vadd.f32 %v900_v33, %v898_v32 }
 0x28c   :  { %v917_v28 = vpop.xlane.xlu0 %916 }
 0x28d   :  { %v920_v36 = vadd.f32 %v919_v34, %v917_v28 }
 0x28f   :  { %v922_v37 = vsel %vm921_vm3, %v901_v35, %v920_v36 }
 0x290   :  { %924 = vst.msk [vmem:[%s1409_s11] sm:$0xff] %vm923_vm4, %v922_v37 }
 0x291   :  { %929 = vsyncpa [#allocation3], 1 }
 0x292   :  { %930 = vsyncpa [#allocation6], 1 }
 0x293   :  { %931 = vsyncpa [#allocation9], 1 }
 0x294   :  { %932 = vsyncpa [#allocation12], 1 }
 0x295   :  { %933 = vsyncpa [#allocation4], 1 }

</bundles_post_ra>
